<compile_context>
chip_gen: v7x
topology: tpu7x:2x2x1
jax: 0.10.0
libtpu: 0.0.40
codegen_flags: <defaults>
</compile_context>

<pallas_src>
import math

import jax
import jax.numpy as jnp
from jax.experimental import pallas as pl
from jax.experimental.pallas import tpu as pltpu

# ----------------------------- mini config -----------------------------
BATCH = 2
AUDIO_LEN = 400      # raw waveform samples
C_CONV = 32          # conv feature-extractor channels
H = 32               # transformer hidden size
I_FF = 64            # FFN intermediate size
NUM_HEADS = 4
HEAD_DIM = H // NUM_HEADS
NUM_LAYERS = 2
VOCAB = 16           # CTC vocab size

K0, S0 = 10, 5                         # conv0 (kernel, stride)
K1, S1 = 3, 2                          # conv1
KP = 3                                 # simplified positional conv kernel
T1 = (AUDIO_LEN - K0) // S0 + 1        # 79
T2 = (T1 - K1) // S1 + 1               # 39
LN_EPS = 1e-5
ATTN_SCALE = 1.0 / math.sqrt(HEAD_DIM)


# ----------------------------- in-kernel math helpers -----------------------------
def _gelu(x):
    # TODO(synk): HF Wav2Vec2 'gelu' is the exact erf form; tanh approximation used here.
    c = math.sqrt(2.0 / math.pi)
    return 0.5 * x * (1.0 + jnp.tanh(c * (x + 0.044715 * x * x * x)))


def _layer_norm(x, g, b, eps=LN_EPS):
    mean = jnp.mean(x, axis=-1, keepdims=True)
    var = jnp.mean((x - mean) ** 2, axis=-1, keepdims=True)
    return (x - mean) * jax.lax.rsqrt(var + eps) * g + b


# ----------------------------- kernel A: conv0 + GroupNorm + GELU -----------------------------
def _feat_extract_kernel(p0_ref, w0_ref, b0_ref, g_ref, beta_ref, o_ref):
    # p0_ref: (T1, K0) im2col patches for one batch element; w0: (K0, C).
    y = jnp.dot(p0_ref[...], w0_ref[...], preferred_element_type=jnp.float32)
    y = y + b0_ref[...]
    # Wav2Vec2 GroupNorm with num_groups == num_channels: per-channel stats over time.
    mean = jnp.mean(y, axis=0, keepdims=True)
    var = jnp.mean((y - mean) ** 2, axis=0, keepdims=True)
    y = (y - mean) * jax.lax.rsqrt(var + LN_EPS) * g_ref[...] + beta_ref[...]
    o_ref[...] = _gelu(y).astype(o_ref.dtype)


# ----------------------------- kernel B: fused conv1 + encoder + lm_head -----------------------------
def _encoder_kernel(
    p1_ref, w1_ref, b1_ref,
    fpg_ref, fpb_ref, fpw_ref, fpb2_ref,
    posw_ref, posb_ref,
    encg_ref, encb_ref,
    qkvw_ref, qkvb_ref, ow_ref, ob_ref,
    ln1g_ref, ln1b_ref, ff1w_ref, ff1b_ref, ff2w_ref, ff2b_ref,
    ln2g_ref, ln2b_ref,
    lmw_ref, lmb_ref,
    logits_ref, hs_ref,
):
    # ---- conv1 (im2col'ed) + GELU: final feature-extractor stage ----
    feat = jnp.dot(p1_ref[...], w1_ref[...], preferred_element_type=jnp.float32)
    feat = _gelu(feat + b1_ref[...])                                        # (T2, C)

    # ---- feature projection: LayerNorm over channels + Linear to H ----
    feat = _layer_norm(feat, fpg_ref[...], fpb_ref[...])
    hidden = jnp.dot(feat, fpw_ref[...],
                     preferred_element_type=jnp.float32) + fpb2_ref[...]    # (T2, H)

    # ---- positional conv embedding (simplified k=3, groups=1, symmetric pad) ----
    # TODO(synk): real Wav2Vec2 uses a weight-normalized grouped conv (k=128, groups=16).
    zrow = jnp.zeros((1, H), jnp.float32)
    padded = jnp.concatenate([zrow, hidden, zrow], axis=0)                  # (T2+2, H)
    pos = posb_ref[...]
    for k in range(KP):
        pos = pos + jnp.dot(padded[k:k + T2, :], posw_ref[k],
                            preferred_element_type=jnp.float32)
    hidden = hidden + _gelu(pos)

    # ---- encoder pre-layer LayerNorm ----
    h = _layer_norm(hidden, encg_ref[...], encb_ref[...])
    hs_ref[0] = h.astype(hs_ref.dtype)

    # ---- transformer encoder layers (post-norm, like wav2vec2-base) ----
    for l in range(NUM_LAYERS):
        # fused QKV projection: (T2, H) @ (H, 3H)
        qkv = jnp.dot(h, qkvw_ref[l], preferred_element_type=jnp.float32) + qkvb_ref[l]
        q = qkv[:, 0:H]
        k_ = qkv[:, H:2 * H]
        v = qkv[:, 2 * H:3 * H]
        o_w_l = ow_ref[l]                                                   # (H, H)

        # multi-head attention, all heads in-VMEM; O-proj folded per head so the
        # per-head (T2, Dh) results are never lane-concatenated.
        attn_out = ob_ref[l]
        for hd in range(NUM_HEADS):
            lo, hi = hd * HEAD_DIM, (hd + 1) * HEAD_DIM
            qh = q[:, lo:hi] * ATTN_SCALE
            kh = k_[:, lo:hi]
            vh = v[:, lo:hi]
            s = jax.lax.dot_general(qh, kh, (((1,), (1,)), ((), ())),
                                    preferred_element_type=jnp.float32)     # (T2, T2)
            m = jnp.max(s, axis=-1, keepdims=True)
            e = jnp.exp(s - m)
            denom = jnp.sum(e, axis=-1, keepdims=True)
            ov = jnp.dot(e, vh, preferred_element_type=jnp.float32)         # (T2, Dh)
            ov = ov * pl.reciprocal(denom, approx=True)                     # scale after p@v
            attn_out = attn_out + jnp.dot(ov, o_w_l[lo:hi, :],
                                          preferred_element_type=jnp.float32)

        h = _layer_norm(h + attn_out, ln1g_ref[l], ln1b_ref[l])
        ff = _gelu(jnp.dot(h, ff1w_ref[l],
                           preferred_element_type=jnp.float32) + ff1b_ref[l])
        ff = jnp.dot(ff, ff2w_ref[l], preferred_element_type=jnp.float32) + ff2b_ref[l]
        h = _layer_norm(h + ff, ln2g_ref[l], ln2b_ref[l])
        hs_ref[l + 1] = h.astype(hs_ref.dtype)

    # ---- CTC lm_head (VOCAB=16 is the only lane-sparse store left; tiny) ----
    logits_ref[...] = (jnp.dot(h, lmw_ref[...], preferred_element_type=jnp.float32)
                       + lmb_ref[...]).astype(logits_ref.dtype)


# ----------------------------- pallas_call wrappers -----------------------------
def _full_spec(shape):
    """Whole-array block, same block on every grid step (weights stay resident)."""
    ndim = len(shape)
    return pl.BlockSpec(shape, lambda b, _nd=ndim: (0,) * _nd)


def feature_extractor(patches0, w0, b0, gn_g, gn_b):
    B = patches0.shape[0]
    return pl.pallas_call(
        _feat_extract_kernel,
        out_shape=jax.ShapeDtypeStruct((B, T1, C_CONV), jnp.float32),
        grid=(B,),
        in_specs=[
            pl.BlockSpec((None, T1, K0), lambda b: (b, 0, 0)),
            _full_spec((K0, C_CONV)),
            _full_spec((1, C_CONV)),
            _full_spec((1, C_CONV)),
            _full_spec((1, C_CONV)),
        ],
        out_specs=pl.BlockSpec((None, T1, C_CONV), lambda b: (b, 0, 0)),
        compiler_params=pltpu.CompilerParams(dimension_semantics=("parallel",)),
    )(patches0, w0, b0, gn_g, gn_b)


def encoder_forward(patches1, enc_inputs):
    B = patches1.shape[0]
    in_specs = [pl.BlockSpec((None, T2, K1 * C_CONV), lambda b: (b, 0, 0))]
    args = [patches1]
    for arr in enc_inputs:
        in_specs.append(_full_spec(arr.shape))
        args.append(arr)
    out_shapes = (
        jax.ShapeDtypeStruct((B, T2, VOCAB), jnp.float32),
        jax.ShapeDtypeStruct((NUM_LAYERS + 1, B, T2, H), jnp.float32),
    )
    out_specs = (
        pl.BlockSpec((None, T2, VOCAB), lambda b: (b, 0, 0)),
        pl.BlockSpec((NUM_LAYERS + 1, None, T2, H), lambda b: (0, b, 0, 0)),
    )
    return pl.pallas_call(
        _encoder_kernel,
        out_shape=out_shapes,
        grid=(B,),
        in_specs=in_specs,
        out_specs=out_specs,
        compiler_params=pltpu.CompilerParams(dimension_semantics=("parallel",)),
    )(*args)


# ----------------------------- conv glue (im2col, channels-last) -----------------------------
def _im2col_channels_last(x, k, s):
    """x: (B, T, Cin) -> (B, T_out, k*Cin); patch layout is k-major / channel-minor."""
    T = x.shape[1]
    T_out = (T - k) // s + 1
    cols = [x[:, i:i + s * T_out:s, :][:, :T_out, :] for i in range(k)]
    return jnp.concatenate(cols, axis=-1)


# ----------------------------- parameters -----------------------------
def init_params(key):
    ks = jax.random.split(key, 16)

    def w(k, shape, scale=0.05):
        return scale * jax.random.normal(k, shape, dtype=jnp.float32)

    p = {
        # feature extractor (2 conv layers; first has GroupNorm like wav2vec2-base)
        "conv0_w": w(ks[0], (C_CONV, 1, K0)), "conv0_b": jnp.zeros((C_CONV,), jnp.float32),
        "gn_g": jnp.ones((C_CONV,), jnp.float32), "gn_b": jnp.zeros((C_CONV,), jnp.float32),
        "conv1_w": w(ks[1], (C_CONV, C_CONV, K1)), "conv1_b": jnp.zeros((C_CONV,), jnp.float32),
        # feature projection
        "fp_ln_g": jnp.ones((1, C_CONV), jnp.float32), "fp_ln_b": jnp.zeros((1, C_CONV), jnp.float32),
        "fp_w": w(ks[2], (C_CONV, H)), "fp_b": jnp.zeros((1, H), jnp.float32),
        # positional conv (simplified)
        "pos_w": w(ks[3], (H, H, KP)), "pos_b": jnp.zeros((H,), jnp.float32),
        # encoder pre-layer LayerNorm
        "enc_ln_g": jnp.ones((1, H), jnp.float32), "enc_ln_b": jnp.zeros((1, H), jnp.float32),
        # lm head
        "lm_w": w(ks[4], (H, VOCAB)), "lm_b": jnp.zeros((1, VOCAB), jnp.float32),
        "layers": [],
    }
    for l in range(NUM_LAYERS):
        kk = jax.random.split(ks[5 + l], 7)
        p["layers"].append({
            "q_w": w(kk[0], (H, H)), "q_b": jnp.zeros((1, H), jnp.float32),
            "k_w": w(kk[1], (H, H)), "k_b": jnp.zeros((1, H), jnp.float32),
            "v_w": w(kk[2], (H, H)), "v_b": jnp.zeros((1, H), jnp.float32),
            "o_w": w(kk[3], (H, H)), "o_b": jnp.zeros((1, H), jnp.float32),
            "ln1_g": jnp.ones((1, H), jnp.float32), "ln1_b": jnp.zeros((1, H), jnp.float32),
            "ff1_w": w(kk[4], (H, I_FF)), "ff1_b": jnp.zeros((1, I_FF), jnp.float32),
            "ff2_w": w(kk[5], (I_FF, H)), "ff2_b": jnp.zeros((1, H), jnp.float32),
            "ln2_g": jnp.ones((1, H), jnp.float32), "ln2_b": jnp.zeros((1, H), jnp.float32),
        })
    return p


def pack_params(p):
    """Reshape / stack params once into the kernel-friendly layouts (channels-last)."""
    def stack(name):
        return jnp.stack([lp[name] for lp in p["layers"]])

    packed = {
        "w0": p["conv0_w"].transpose(2, 1, 0).reshape(K0 * 1, C_CONV),     # (K0, C)
        "b0": p["conv0_b"].reshape(1, C_CONV),
        "gn_g": p["gn_g"].reshape(1, C_CONV),
        "gn_b": p["gn_b"].reshape(1, C_CONV),
        "w1": p["conv1_w"].transpose(2, 1, 0).reshape(K1 * C_CONV, C_CONV),  # (K1*C, C)
        "b1": p["conv1_b"].reshape(1, C_CONV),
        "fp_ln_g": p["fp_ln_g"], "fp_ln_b": p["fp_ln_b"],
        "fp_w": p["fp_w"], "fp_b": p["fp_b"],
        "pos_w": p["pos_w"].transpose(2, 1, 0),                             # (KP, H, H)
        "pos_b": p["pos_b"].reshape(1, H),
        "enc_ln_g": p["enc_ln_g"], "enc_ln_b": p["enc_ln_b"],
        "lm_w": p["lm_w"], "lm_b": p["lm_b"],
        # fused QKV weights: (L, H, 3H) / (L, 1, 3H)
        "qkv_w": jnp.stack([jnp.concatenate([lp["q_w"], lp["k_w"], lp["v_w"]], axis=1)
                            for lp in p["layers"]]),
        "qkv_b": jnp.stack([jnp.concatenate([lp["q_b"], lp["k_b"], lp["v_b"]], axis=1)
                            for lp in p["layers"]]),
        "o_w": stack("o_w"), "o_b": stack("o_b"),
        "ln1_g": stack("ln1_g"), "ln1_b": stack("ln1_b"),
        "ff1_w": stack("ff1_w"), "ff1_b": stack("ff1_b"),
        "ff2_w": stack("ff2_w"), "ff2_b": stack("ff2_b"),
        "ln2_g": stack("ln2_g"), "ln2_b": stack("ln2_b"),
    }
    return packed


# ----------------------------- forward pass -----------------------------
def forward(packed, batch, return_logits=True):
    # TODO(synk): attention_mask handling (batch.get('attention_mask')) not modeled;
    # inference path with no padding mask.
    wav = batch["waveforms"]                                    # (B, T_samples)

    # conv0 im2col (Cin=1): (B, T1, K0), channels-last throughout.
    patches0 = _im2col_channels_last(wav[:, :, None], K0, S0)
    feat = feature_extractor(patches0, packed["w0"], packed["b0"],
                             packed["gn_g"], packed["gn_b"])    # (B, T1, C)

    # conv1 im2col: (B, T2, K1*C)
    patches1 = _im2col_channels_last(feat, K1, S1)

    enc_inputs = [
        packed["w1"], packed["b1"],
        packed["fp_ln_g"], packed["fp_ln_b"], packed["fp_w"], packed["fp_b"],
        packed["pos_w"], packed["pos_b"],
        packed["enc_ln_g"], packed["enc_ln_b"],
        packed["qkv_w"], packed["qkv_b"], packed["o_w"], packed["o_b"],
        packed["ln1_g"], packed["ln1_b"],
        packed["ff1_w"], packed["ff1_b"], packed["ff2_w"], packed["ff2_b"],
        packed["ln2_g"], packed["ln2_b"],
        packed["lm_w"], packed["lm_b"],
    ]
    logits, hidden_states = encoder_forward(patches1, enc_inputs)

    result = {"logits": logits, "hidden_states": hidden_states}
    if return_logits:
        return result
    # TODO(synk): CTC loss (outputs.loss when 'labels' in batch) not implemented.
    return result


# ----------------------------- main -----------------------------
if __name__ == "__main__":
    key = jax.random.PRNGKey(0)
    pkey, xkey = jax.random.split(key)
    params = init_params(pkey)
    packed = pack_params(params)
    waveforms = jax.random.normal(xkey, (BATCH, AUDIO_LEN), dtype=jnp.float32)
    batch = {"waveforms": waveforms}

    out = forward(packed, batch, return_logits=True)
    jax.block_until_ready(out)

    assert out["logits"].shape == (BATCH, T2, VOCAB)
    assert out["hidden_states"].shape == (NUM_LAYERS + 1, BATCH, T2, H)
    assert bool(jnp.all(jnp.isfinite(out["logits"])))
    print("KERNEL_OK")
</pallas_src>

<mosaic_0001>
module attributes {stable_mosaic.version = 11 : i64} {
  func.func @_feat_extract_kernel(%arg0: i32, %arg1: memref<1x79x10xf32, #tpu.memory_space<vmem>>, %arg2: memref<10x32xf32, #tpu.memory_space<vmem>>, %arg3: memref<1x32xf32, #tpu.memory_space<vmem>>, %arg4: memref<1x32xf32, #tpu.memory_space<vmem>>, %arg5: memref<1x32xf32, #tpu.memory_space<vmem>>, %arg6: memref<1x79x32xf32, #tpu.memory_space<vmem>>) attributes {dimension_semantics = [#tpu.dimension_semantics<parallel>], iteration_bounds = array<i64: 2>, scalar_prefetch = 0 : i64, scratch_operands = 0 : i64, tpu.core_type = #tpu.core_type<tc>, window_params = [{transform_indices = @transform_0, window_bounds = array<i64: 1, 79, 10>}, {pipeline_mode = #tpu.pipeline_mode<synchronous>, transform_indices = @transform_1, window_bounds = array<i64: 10, 32>}, {pipeline_mode = #tpu.pipeline_mode<synchronous>, transform_indices = @transform_2, window_bounds = array<i64: 1, 32>}, {pipeline_mode = #tpu.pipeline_mode<synchronous>, transform_indices = @transform_3, window_bounds = array<i64: 1, 32>}, {pipeline_mode = #tpu.pipeline_mode<synchronous>, transform_indices = @transform_4, window_bounds = array<i64: 1, 32>}, {transform_indices = @transform_5, window_bounds = array<i64: 1, 79, 32>}]} {
    %c0 = arith.constant 0 : index
    %c0_0 = arith.constant 0 : index
    %c0_1 = arith.constant 0 : index
    %0 = vector.load %arg1[%c0, %c0_0, %c0_1] : memref<1x79x10xf32, #tpu.memory_space<vmem>>, vector<1x79x10xf32>
    %1 = vector.shape_cast %0 : vector<1x79x10xf32> to vector<79x10xf32>
    %c0_2 = arith.constant 0 : index
    %c0_3 = arith.constant 0 : index
    %2 = vector.load %arg2[%c0_2, %c0_3] : memref<10x32xf32, #tpu.memory_space<vmem>>, vector<10x32xf32>
    %cst = arith.constant dense<0.000000e+00> : vector<79x32xf32>
    %3 = tpu.matmul %1, %2, %cst {dimension_numbers = #tpu.dot_dimension_numbers<[1], [0], [0], [1], [0, 0, 1, 1], [], []>} : vector<79x10xf32>, vector<10x32xf32>, vector<79x32xf32> -> vector<79x32xf32>
    %c0_4 = arith.constant 0 : index
    %c0_5 = arith.constant 0 : index
    %4 = vector.load %arg3[%c0_4, %c0_5] : memref<1x32xf32, #tpu.memory_space<vmem>>, vector<1x32xf32>
    %5 = vector.broadcast %4 : vector<1x32xf32> to vector<79x32xf32>
    %6 = arith.addf %3, %5 : vector<79x32xf32>
    %cst_6 = arith.constant dense<0.000000e+00> : vector<32xf32>
    %7 = vector.multi_reduction <add>, %6, %cst_6 [0] : vector<79x32xf32> to vector<32xf32>
    %8 = vector.shape_cast %7 : vector<32xf32> to vector<1x32xf32>
    %cst_7 = arith.constant 7.900000e+01 : f32
    %9 = vector.broadcast %cst_7 : f32 to vector<1x32xf32>
    %10 = arith.divf %8, %9 : vector<1x32xf32>
    %11 = vector.broadcast %10 : vector<1x32xf32> to vector<79x32xf32>
    %12 = arith.subf %6, %11 : vector<79x32xf32>
    %13 = arith.mulf %12, %12 : vector<79x32xf32>
    %cst_8 = arith.constant dense<0.000000e+00> : vector<32xf32>
    %14 = vector.multi_reduction <add>, %13, %cst_8 [0] : vector<79x32xf32> to vector<32xf32>
    %15 = vector.shape_cast %14 : vector<32xf32> to vector<1x32xf32>
    %cst_9 = arith.constant 7.900000e+01 : f32
    %16 = vector.broadcast %cst_9 : f32 to vector<1x32xf32>
    %17 = arith.divf %15, %16 : vector<1x32xf32>
    %18 = vector.broadcast %10 : vector<1x32xf32> to vector<79x32xf32>
    %19 = arith.subf %6, %18 : vector<79x32xf32>
    %cst_10 = arith.constant 9.99999974E-6 : f32
    %20 = vector.broadcast %cst_10 : f32 to vector<1x32xf32>
    %21 = arith.addf %17, %20 : vector<1x32xf32>
    %22 = math.rsqrt %21 : vector<1x32xf32>
    %23 = vector.broadcast %22 : vector<1x32xf32> to vector<79x32xf32>
    %24 = arith.mulf %19, %23 : vector<79x32xf32>
    %c0_11 = arith.constant 0 : index
    %c0_12 = arith.constant 0 : index
    %25 = vector.load %arg4[%c0_11, %c0_12] : memref<1x32xf32, #tpu.memory_space<vmem>>, vector<1x32xf32>
    %26 = vector.broadcast %25 : vector<1x32xf32> to vector<79x32xf32>
    %27 = arith.mulf %24, %26 : vector<79x32xf32>
    %c0_13 = arith.constant 0 : index
    %c0_14 = arith.constant 0 : index
    %28 = vector.load %arg5[%c0_13, %c0_14] : memref<1x32xf32, #tpu.memory_space<vmem>>, vector<1x32xf32>
    %29 = vector.broadcast %28 : vector<1x32xf32> to vector<79x32xf32>
    %30 = arith.addf %27, %29 : vector<79x32xf32>
    %cst_15 = arith.constant 5.000000e-01 : f32
    %31 = vector.broadcast %cst_15 : f32 to vector<79x32xf32>
    %32 = arith.mulf %31, %30 : vector<79x32xf32>
    %cst_16 = arith.constant 4.471500e-02 : f32
    %33 = vector.broadcast %cst_16 : f32 to vector<79x32xf32>
    %34 = arith.mulf %33, %30 : vector<79x32xf32>
    %35 = arith.mulf %34, %30 : vector<79x32xf32>
    %36 = arith.mulf %35, %30 : vector<79x32xf32>
    %37 = arith.addf %30, %36 : vector<79x32xf32>
    %cst_17 = arith.constant 0.797884583 : f32
    %38 = vector.broadcast %cst_17 : f32 to vector<79x32xf32>
    %39 = arith.mulf %38, %37 : vector<79x32xf32>
    %40 = math.tanh %39 : vector<79x32xf32>
    %cst_18 = arith.constant 1.000000e+00 : f32
    %41 = vector.broadcast %cst_18 : f32 to vector<79x32xf32>
    %42 = arith.addf %41, %40 : vector<79x32xf32>
    %43 = arith.mulf %32, %42 : vector<79x32xf32>
    %c0_19 = arith.constant 0 : index
    %c0_20 = arith.constant 0 : index
    %c0_21 = arith.constant 0 : index
    %44 = vector.load %arg6[%c0_19, %c0_20, %c0_21] : memref<1x79x32xf32, #tpu.memory_space<vmem>>, vector<1x79x32xf32>
    %45 = vector.shape_cast %44 : vector<1x79x32xf32> to vector<79x32xf32>
    %46 = vector.shape_cast %43 : vector<79x32xf32> to vector<1x79x32xf32>
    tpu.vector_store %arg6[%c0_19, %c0_20, %c0_21], %46 {strides = array<i32>} : memref<1x79x32xf32, #tpu.memory_space<vmem>>, vector<1x79x32xf32>,
    return
  }
  func.func @transform_0(%arg0: i32) -> (i32, i32, i32) {
    %c0_i32 = arith.constant 0 : i32
    %c0_i32_0 = arith.constant 0 : i32
    %c0_i32_1 = arith.constant 0 : i32
    return %arg0, %c0_i32, %c0_i32_0 : i32, i32, i32
  }
  func.func @transform_1(%arg0: i32) -> (i32, i32) {
    %c0_i32 = arith.constant 0 : i32
    %c0_i32_0 = arith.constant 0 : i32
    %c0_i32_1 = arith.constant 0 : i32
    return %c0_i32, %c0_i32_0 : i32, i32
  }
  func.func @transform_2(%arg0: i32) -> (i32, i32) {
    %c0_i32 = arith.constant 0 : i32
    %c0_i32_0 = arith.constant 0 : i32
    %c0_i32_1 = arith.constant 0 : i32
    return %c0_i32, %c0_i32_0 : i32, i32
  }
  func.func @transform_3(%arg0: i32) -> (i32, i32) {
    %c0_i32 = arith.constant 0 : i32
    %c0_i32_0 = arith.constant 0 : i32
    %c0_i32_1 = arith.constant 0 : i32
    return %c0_i32, %c0_i32_0 : i32, i32
  }
  func.func @transform_4(%arg0: i32) -> (i32, i32) {
    %c0_i32 = arith.constant 0 : i32
    %c0_i32_0 = arith.constant 0 : i32
    %c0_i32_1 = arith.constant 0 : i32
    return %c0_i32, %c0_i32_0 : i32, i32
  }
  func.func @transform_5(%arg0: i32) -> (i32, i32, i32) {
    %c0_i32 = arith.constant 0 : i32
    %c0_i32_0 = arith.constant 0 : i32
    %c0_i32_1 = arith.constant 0 : i32
    return %arg0, %c0_i32, %c0_i32_0 : i32, i32, i32
  }
}

</mosaic_0001>

<bundles_post_ra>
// kernel: tpu_custom_call.1
= control target key start
LH: loop header
LB: loop body
LE: loop exit
PB: predicated region body
PF: predicated region fallthrough
CT: control target
= control target key end

     0   :  { %s803_s18 = smov 0   ;;  %s964_s0 = inlined_call_operand.vmem [shape: f32[2,79,10], index: 0, kind: input, shape index: {}]   ;;  %s965_s1 = inlined_call_operand.vmem [shape: f32[10,32], index: 1, kind: input, shape index: {}]   ;;  %s966_s2 = inlined_call_operand.vmem [shape: f32[1,32], index: 2, kind: input, shape index: {}]   ;;  %s967_s3 = inlined_call_operand.vmem [shape: f32[1,32], index: 3, kind: input, shape index: {}]   ;;  %s968_s4 = inlined_call_operand.vmem [shape: f32[1,32], index: 4, kind: input, shape index: {}]   ;;  %s969_s5 = inlined_call_operand.vmem [shape: f32[2,79,32], index: 5, kind: output, shape index: {}]  }
   0x1 LB: > { %s670_s19 = sadd.s32 4294967295, %s770_s18   ;;  %p674_p0 = scmp.ge.s32.totalorder %s770_s18, 1  ;;  %s770_s18 = sphi %s803_s18, %s15_s18  }
   0x2   : > { %p187_p1 = scmp.lt.s32.totalorder %s770_s18, 3 }
   0x4   : > { %p188_p2 = pnand %p674_p0, %p187_p1 }
   0x5   : > { %v235_v0 = vld [vmem:[%s965_s1] sm:$0xff] (!%p188_p2)  ;;  %v236_v1 = vld [vmem:[%s965_s1 + $0x8] sm:$0x3] (!%p188_p2)  ;;  %vm275_vm0 = vcmask (!%p188_p2), 1041408   ;;  %p215_p3 = scmp.lt.s32.totalorder (!%p188_p2), %s670_s19, 1  ;;  %vm772_vm1 = vmmov (!%p188_p2), 1  }
   0x6   : > { %191 = sbr.rel (%p188_p2) target bundleno = 363 (0x16b), region = 40  ;;  %v724_v2 = vpack.c.bf16 (!%p188_p2), %v236_v1, %v235_v0  ;;  %vm725_vm2 = vmpackc.low (!%p188_p2), %vm275_vm0, %vm772_vm1  ;;  %vm244_vm3 = vcmask (!%p188_p2), 80896   ;;  %v677_v13 = vld [vmem:[%s966_s2] ss:$0 sm:$0xff] (!%p188_p2)  ;;  %vm394_vm4 = vcmask (!%p188_p2), 261120   ;;  %vm412_vm5 = vcmask (!%p188_p2), 260096  }
   0x8   : > { %726 = vmatprep.subr.msk.bf16.mxu0 (!%p188_p2), %vm725_vm2, %v724_v2  ;;  %730 = vmatprep.subr.msk.bf16.mxu1 (!%p188_p2), %vm725_vm2, %v724_v2 }
   0x9   : > { %729 = vmatpush3.bf16.msk.msra.mxu0 (!%p188_p2), %vm725_vm2, %v724_v2  ;;  %731 = vmatpush3.bf16.msk.msra.mxu1 (!%p188_p2), %vm725_vm2, %v724_v2 }
   0xd   : > { %s971_s19 = smov (!%p215_p3, %s670_s19), 1 }
   0xe   : > { %s732_s24 = smul.u32 80, %s971_s19 }
  0x10   : > { %s219_s27 = scalar_lea.vmem %s964_s0, %s732_s24  ;;  %s930_s11 = scalar_lea.vmem %s969_s5, %s732_s24 }
  0x11   : > { %v225_v3 = vld [vmem:[%s219_s27] sm:$0xff]  ;;  %v226_v4 = vld [vmem:[%s219_s27 + $0x8] sm:$0xff]  ;;  %v227_v5 = vld [vmem:[%s219_s27 + $0x10] sm:$0xff] }
  0x12   : > { %709 = vmatprep.mubr.msk.f32.mxu0 %vm244_vm3, %v225_v3  ;;  %v231_v6 = vld [vmem:[%s219_s27 + $0x30] sm:$0xff]  ;;  %v232_v7 = vld [vmem:[%s219_s27 + $0x38] sm:$0xff]  ;;  %v233_v8 = vld [vmem:[%s219_s27 + $0x40] sm:$0xff] }
  0x13   : > { %710 = vmatmul.mubr.msk.f32.vlgmr.msra.gmra.mrb[0].mxu0 %vm244_vm3, %v226_v4  ;;  %v228_v9 = vld [vmem:[%s219_s27 + $0x18] sm:$0xff]  ;;  %718 = vmatprep.mubr.msk.f32.mxu1 %vm244_vm3, %v231_v6  ;;  %v229_v10 = vld [vmem:[%s219_s27 + $0x20] sm:$0xff]  ;;  %v234_v11 = vld [vmem:[%s219_s27 + $0x48] sm:$0x7f] }
  0x14   : > { %712 = vmatprep.mubr.msk.f32.mxu0 %vm244_vm3, %v227_v5  ;;  %719 = vmatmul.mubr.msk.f32.vlgmr.msra.gmra.mrb[0].mxu1 %vm244_vm3, %v232_v7  ;;  %v230_v12 = vld [vmem:[%s219_s27 + $0x28] sm:$0xff] }
  0x15   : > { %721 = vmatprep.mubr.msk.f32.mxu1 %vm244_vm3, %v233_v8 }
  0x17   : > { %713 = vmatmul.mubr.msk.f32.gmra.mrb[2].mxu0 %vm244_vm3, %v228_v9 }
  0x18   : > { %715 = vmatprep.mubr.msk.f32.mxu0 %vm244_vm3, %v229_v10  ;;  %722 = vmatmul.mubr.msk.f32.gmra.mrb[2].mxu1 %vm244_vm3, %v234_v11 }
  0x1b   : > { %716 = vmatmul.mubr.msk.f32.gmra.mrb[4].mxu0 %vm244_vm3, %v230_v12 }
  0xe6   : > { %v711_v14 = vpop.f32.mrb[0].mxu0 }
  0xe7   : > { %v351_v15 = vadd.f32 %v711_v14, %v677_v13  ;;  %v345_v16 = vpop.f32.mrb[1].mxu0  ;;  %v720_v18 = vpop.f32.mrb[0].mxu1 }
  0xe8   : > { %v346_v17 = vadd.f32 %v677_v13, %v345_v16  ;;  %v375_v20 = vpop.f32.mrb[1].mxu1  ;;  %v381_v41 = vadd.f32 %v720_v18, %v677_v13 }
  0xe9   : > { %v396_v19 = vsel %vm394_vm4, %v351_v15, 0.0  ;;  %v376_v36 = vadd.f32 %v677_v13, %v375_v20 }
  0xea   : > { %v395_v21 = vsel %vm394_vm4, %v346_v17, 0.0  ;;  %v714_v22 = vpop.f32.mrb[2].mxu0  ;;  %v408_v46 = vsel %vm394_vm4, %v381_v41, 0.0 }
  0xeb   : > { %v397_v23 = vadd.f32 %v396_v19, %v395_v21  ;;  %v355_v24 = vpop.f32.mrb[3].mxu0  ;;  %v361_v25 = vadd.f32 %v714_v22, %v677_v13  ;;  %v723_v27 = vpop.f32.mrb[2].mxu1  ;;  %v406_v42 = vsel %vm394_vm4, %v376_v36, 0.0 }
  0xec   : > { %v356_v26 = vadd.f32 %v677_v13, %v355_v24  ;;  %v385_v28 = vpop.f32.mrb[3].mxu1  ;;  %v391_v47 = vadd.f32 %v723_v27, %v677_v13 }
  0xed   : > { %v400_v33 = vsel %vm394_vm4, %v361_v25, 0.0  ;;  %v386_v43 = vadd.f32 %v677_v13, %v385_v28 }
  0xee   : > { %v398_v29 = vsel %vm394_vm4, %v356_v26, 0.0  ;;  %v717_v30 = vpop.f32.mrb[4].mxu0  ;;  %v413_v51 = vsel %vm412_vm5, %v391_v47, 0.0 }
  0xef   : > { %v399_v31 = vadd.f32 %v398_v29, %v397_v23  ;;  %v365_v32 = vpop.f32.mrb[5].mxu0  ;;  %v371_v34 = vadd.f32 %v717_v30, %v677_v13  ;;  %v410_v48 = vsel %vm394_vm4, %v386_v43, 0.0 }
  0xf0   : > { %v366_v35 = vadd.f32 %v677_v13, %v365_v32 }
  0xf1   : > { %v401_v37 = vadd.f32 %v400_v33, %v399_v31  ;;  %v404_v40 = vsel %vm394_vm4, %v371_v34, 0.0 }
  0xf2   : > { %v402_v38 = vsel %vm394_vm4, %v366_v35, 0.0 }
  0xf3   : > { %v403_v39 = vadd.f32 %v402_v38, %v401_v37 }
  0xf5   : > { %v405_v44 = vadd.f32 %v404_v40, %v403_v39 }
  0xf7   : > { %v407_v45 = vadd.f32 %v406_v42, %v405_v44  ;;  %v689_v44 = vld [vmem:[%s967_s3] ss:$0 sm:$0xff] }
  0xf9   : > { %v409_v49 = vadd.f32 %v408_v46, %v407_v45 }
  0xfb   : > { %v411_v50 = vadd.f32 %v410_v48, %v409_v49 }
  0xfd   : > { %v414_v52 = vadd.f32 %v413_v51, %v411_v50 }
  0xff   : > { %v415_v53 = vrot.slane %v414_v52, 4 }
 0x101   : > { %v416_v54 = vadd.f32 %v415_v53, %v414_v52 }
 0x103   : > { %v417_v55 = vrot.slane %v416_v54, 2 }
 0x105   : > { %v418_v56 = vadd.f32 %v417_v55, %v416_v54 }
 0x107   : > { %v419_v57 = vrot.slane %v418_v56, 1 }
 0x109   : > { %v420_v58 = vadd.f32 %v419_v57, %v418_v56 }
 0x10b   : > { %v422_v59 = vmul.f32 0.012658228, %v420_v58 }
 0x10d   : > { %v423_v60 = vsub.f32 %v346_v17, %v422_v59  ;;  %v424_v61 = vsub.f32 %v351_v15, %v422_v59  ;;  %v425_v62 = vsub.f32 %v356_v26, %v422_v59  ;;  %v426_v63 = vsub.f32 %v361_v25, %v422_v59 }
 0x10e   : > { %v427_v0 = vsub.f32 %v366_v35, %v422_v59  ;;  %v428_v1 = vsub.f32 %v371_v34, %v422_v59  ;;  %v429_v2 = vsub.f32 %v376_v36, %v422_v59  ;;  %v430_v3 = vsub.f32 %v381_v41, %v422_v59 }
 0x10f   : > { %v431_v4 = vsub.f32 %v386_v43, %v422_v59  ;;  %v432_v5 = vsub.f32 %v391_v47, %v422_v59  ;;  %v433_v6 = vmul.f32 %v423_v60, %v423_v60  ;;  %v434_v7 = vmul.f32 %v424_v61, %v424_v61 }
 0x110   : > { %v435_v8 = vmul.f32 %v425_v62, %v425_v62  ;;  %v436_v9 = vmul.f32 %v426_v63, %v426_v63  ;;  %v437_v13 = vmul.f32 %v427_v0, %v427_v0  ;;  %v438_v16 = vmul.f32 %v428_v1, %v428_v1 }
 0x111   : > { %v443_v10 = vsel %vm394_vm4, %v433_v6, 0.0  ;;  %v444_v11 = vsel %vm394_vm4, %v434_v7, 0.0  ;;  %v439_v19 = vmul.f32 %v429_v2, %v429_v2  ;;  %v440_v22 = vmul.f32 %v430_v3, %v430_v3  ;;  %v690_v7 = vld [vmem:[%s968_s4] ss:$0 sm:$0xff] }
 0x112   : > { %v445_v12 = vadd.f32 %v444_v11, %v443_v10  ;;  %v446_v14 = vsel %vm394_vm4, %v435_v8, 0.0  ;;  %v448_v17 = vsel %vm394_vm4, %v436_v9, 0.0  ;;  %v450_v20 = vsel %vm394_vm4, %v437_v13, 0.0 }
 0x113   : > { %v452_v23 = vsel %vm394_vm4, %v438_v16, 0.0  ;;  %v441_v25 = vmul.f32 %v431_v4, %v431_v4  ;;  %v454_v26 = vsel %vm394_vm4, %v439_v19, 0.0  ;;  %v442_v28 = vmul.f32 %v432_v5, %v432_v5 }
 0x114   : > { %v447_v15 = vadd.f32 %v446_v14, %v445_v12  ;;  %v456_v29 = vsel %vm394_vm4, %v440_v22, 0.0 }
 0x115   : > { %v458_v31 = vsel %vm394_vm4, %v441_v25, 0.0  ;;  %v460_v33 = vsel %vm412_vm5, %v442_v28, 0.0 }
 0x116   : > { %v449_v18 = vadd.f32 %v448_v17, %v447_v15 }
 0x118   : > { %v451_v21 = vadd.f32 %v450_v20, %v449_v18 }
 0x11a   : > { %v453_v24 = vadd.f32 %v452_v23, %v451_v21 }
 0x11c   : > { %v455_v27 = vadd.f32 %v454_v26, %v453_v24 }
 0x11e   : > { %v457_v30 = vadd.f32 %v456_v29, %v455_v27 }
 0x120   : > { %v459_v32 = vadd.f32 %v458_v31, %v457_v30 }
 0x122   : > { %v461_v34 = vadd.f32 %v460_v33, %v459_v32 }
 0x124   : > { %v462_v35 = vrot.slane %v461_v34, 4 }
 0x126   : > { %v463_v36 = vadd.f32 %v462_v35, %v461_v34 }
 0x128   : > { %v464_v37 = vrot.slane %v463_v36, 2 }
 0x12a   : > { %v465_v38 = vadd.f32 %v464_v37, %v463_v36 }
 0x12c   : > { %v466_v39 = vrot.slane %v465_v38, 1 }
 0x12e   : > { %v467_v40 = vadd.f32 %v466_v39, %v465_v38 }
 0x130   : > { %v468_v41 = vmul.f32 0.012658228, %v467_v40 }
 0x132   : > { %v469_v42 = vadd.f32 1e-05, %v468_v41 }
 0x134   : > { %742 = vrsqrt.f32 %v469_v42 }
 0x13e   : > { %v743_v43 = vpop.eup %742 }
 0x13f   : > { %v471_v45 = vmul.f32 %v743_v43, %v423_v60  ;;  %v472_v46 = vmul.f32 %v743_v43, %v424_v61  ;;  %v473_v47 = vmul.f32 %v743_v43, %v425_v62  ;;  %v474_v48 = vmul.f32 %v743_v43, %v426_v63 }
 0x140   : > { %v475_v49 = vmul.f32 %v743_v43, %v427_v0  ;;  %v476_v50 = vmul.f32 %v743_v43, %v428_v1  ;;  %v477_v51 = vmul.f32 %v743_v43, %v429_v2  ;;  %v478_v52 = vmul.f32 %v743_v43, %v430_v3 }
 0x141   : > { %v479_v53 = vmul.f32 %v743_v43, %v431_v4  ;;  %v480_v54 = vmul.f32 %v743_v43, %v432_v5  ;;  %v488_v55 = vmul.f32 %v689_v44, %v471_v45  ;;  %v489_v56 = vmul.f32 %v689_v44, %v472_v46 }
 0x142   : > { %v490_v57 = vmul.f32 %v689_v44, %v473_v47  ;;  %v491_v58 = vmul.f32 %v689_v44, %v474_v48  ;;  %v492_v59 = vmul.f32 %v689_v44, %v475_v49  ;;  %v493_v6 = vmul.f32 %v689_v44, %v476_v50 }
 0x143   : > { %v494_v60 = vmul.f32 %v689_v44, %v477_v51  ;;  %v495_v61 = vmul.f32 %v689_v44, %v478_v52  ;;  %v496_v62 = vmul.f32 %v689_v44, %v479_v53  ;;  %v497_v63 = vmul.f32 %v689_v44, %v480_v54 }
 0x144   : > { %v864_v0 = vadd.f32 %v690_v7, %v488_v55  ;;  %v866_v1 = vadd.f32 %v690_v7, %v489_v56  ;;  %v868_v2 = vadd.f32 %v690_v7, %v490_v57  ;;  %v870_v3 = vadd.f32 %v690_v7, %v491_v58 }
 0x145   : > { %v872_v4 = vadd.f32 %v690_v7, %v492_v59  ;;  %v874_v5 = vadd.f32 %v690_v7, %v493_v6  ;;  %v876_v8 = vadd.f32 %v690_v7, %v494_v60  ;;  %v878_v9 = vadd.f32 %v690_v7, %v495_v61 }
 0x146   : > { %v880_v10 = vadd.f32 %v690_v7, %v496_v62  ;;  %v882_v11 = vadd.f32 %v690_v7, %v497_v63  ;;  %v525_v12 = vmul.f32 0.044715, %v864_v0  ;;  %v526_v13 = vmul.f32 0.044715, %v866_v1 }
 0x147   : > { %v527_v14 = vmul.f32 0.044715, %v868_v2  ;;  %v528_v15 = vmul.f32 0.044715, %v870_v3  ;;  %v529_v16 = vmul.f32 0.044715, %v872_v4 }
 0x148   : > { %v530_v17 = vmul.f32 0.044715, %v874_v5  ;;  %v531_v18 = vmul.f32 0.044715, %v876_v8  ;;  %v532_v19 = vmul.f32 0.044715, %v878_v9  ;;  %v535_v21 = vmul.f32 %v525_v12, %v864_v0 }
 0x149   : > { %v533_v20 = vmul.f32 0.044715, %v880_v10  ;;  %v534_v22 = vmul.f32 0.044715, %v882_v11  ;;  %v536_v23 = vmul.f32 %v526_v13, %v866_v1  ;;  %v537_v24 = vmul.f32 %v527_v14, %v868_v2 }
 0x14a   : > { %v538_v25 = vmul.f32 %v528_v15, %v870_v3  ;;  %v539_v26 = vmul.f32 %v529_v16, %v872_v4  ;;  %v540_v27 = vmul.f32 %v530_v17, %v874_v5  ;;  %v541_v28 = vmul.f32 %v531_v18, %v876_v8 }
 0x14b   : > { %v542_v29 = vmul.f32 %v532_v19, %v878_v9  ;;  %v543_v30 = vmul.f32 %v533_v20, %v880_v10  ;;  %v544_v31 = vmul.f32 %v534_v22, %v882_v11  ;;  %v545_v32 = vmul.f32 %v535_v21, %v864_v0 }
 0x14c   : > { %v546_v33 = vmul.f32 %v536_v23, %v866_v1  ;;  %v547_v34 = vmul.f32 %v537_v24, %v868_v2  ;;  %v548_v35 = vmul.f32 %v538_v25, %v870_v3  ;;  %v549_v36 = vmul.f32 %v539_v26, %v872_v4 }
 0x14d   : > { %v550_v37 = vmul.f32 %v540_v27, %v874_v5  ;;  %v551_v38 = vmul.f32 %v541_v28, %v876_v8  ;;  %v552_v39 = vmul.f32 %v542_v29, %v878_v9  ;;  %v553_v40 = vmul.f32 %v543_v30, %v880_v10 }
 0x14e   : > { %v555_v41 = vadd.f32 %v545_v32, %v864_v0  ;;  %v556_v42 = vadd.f32 %v546_v33, %v866_v1  ;;  %v557_v43 = vadd.f32 %v547_v34, %v868_v2  ;;  %v558_v44 = vadd.f32 %v548_v35, %v870_v3 }
 0x14f   : > { %v554_v45 = vmul.f32 %v544_v31, %v882_v11  ;;  %v559_v46 = vadd.f32 %v549_v36, %v872_v4  ;;  %v560_v47 = vadd.f32 %v550_v37, %v874_v5  ;;  %v561_v48 = vadd.f32 %v551_v38, %v876_v8 }
 0x150   : > { %v565_v49 = vmul.f32 0.7978846, %v555_v41  ;;  %v566_v50 = vmul.f32 0.7978846, %v556_v42  ;;  %v562_v51 = vadd.f32 %v552_v39, %v878_v9  ;;  %v567_v52 = vmul.f32 0.7978846, %v557_v43 }
 0x151   : > { %v568_v53 = vmul.f32 0.7978846, %v558_v44  ;;  %v563_v54 = vadd.f32 %v553_v40, %v880_v10  ;;  %v569_v55 = vmul.f32 0.7978846, %v559_v46  ;;  %v564_v56 = vadd.f32 %v554_v45, %v882_v11 }
 0x152   : > { %744 = vtanh.f32 %v565_v49  ;;  %v570_v57 = vmul.f32 0.7978846, %v560_v47  ;;  %v571_v58 = vmul.f32 0.7978846, %v561_v48  ;;  %v572_v59 = vmul.f32 0.7978846, %v562_v51 }
 0x153   : > { %746 = vtanh.f32 %v566_v50  ;;  %v573_v6 = vmul.f32 0.7978846, %v563_v54  ;;  %v574_v7 = vmul.f32 0.7978846, %v564_v56  ;;  %v515_v62 = vmul.f32 0.5, %v864_v0 }
 0x154   : > { %748 = vtanh.f32 %v567_v52  ;;  %v516_v13 = vmul.f32 0.5, %v866_v1  ;;  %v517_v16 = vmul.f32 0.5, %v868_v2  ;;  %v518_v0 = vmul.f32 0.5, %v870_v3 }
 0x155   : > { %750 = vtanh.f32 %v568_v53  ;;  %v519_v23 = vmul.f32 0.5, %v872_v4  ;;  %v520_v2 = vmul.f32 0.5, %v874_v5  ;;  %v521_v28 = vmul.f32 0.5, %v876_v8 }
 0x156   : > { %752 = vtanh.f32 %v569_v55  ;;  %v522_v31 = vmul.f32 0.5, %v878_v9  ;;  %v523_v34 = vmul.f32 0.5, %v880_v10  ;;  %v524_v36 = vmul.f32 0.5, %v882_v11 }
 0x157   : > { %754 = vtanh.f32 %v570_v57 }
 0x158   : > { %756 = vtanh.f32 %v571_v58 }
 0x159   : > { %758 = vtanh.f32 %v572_v59 }
 0x15a   : > { %760 = vtanh.f32 %v573_v6 }
 0x15b   : > { %762 = vtanh.f32 %v574_v7 }
 0x15c   : > { %v745_v60 = vpop.eup %744 }
 0x15d   : > { %v747_v61 = vpop.eup %746  ;;  %v585_v63 = vadd.f32 1.0, %v745_v60 }
 0x15e   : > { %v749_v12 = vpop.eup %748  ;;  %v586_v14 = vadd.f32 1.0, %v747_v61 }
 0x15f   : > { %v751_v15 = vpop.eup %750  ;;  %v587_v17 = vadd.f32 1.0, %v749_v12  ;;  %v595_v18 = vmul.f32 %v585_v63, %v515_v62 }
 0x160   : > { %v753_v19 = vpop.eup %752  ;;  %v588_v20 = vadd.f32 1.0, %v751_v15  ;;  %v596_v21 = vmul.f32 %v586_v14, %v516_v13 }
 0x161   : > { %v755_v22 = vpop.eup %754  ;;  %v589_v24 = vadd.f32 1.0, %v753_v19  ;;  %v597_v25 = vmul.f32 %v587_v17, %v517_v16  ;;  %605 = vst.msk [vmem:[%s930_s11] sm:$0xff] %vm394_vm4, %v595_v18 }
 0x162   : > { %v757_v1 = vpop.eup %756  ;;  %v590_v26 = vadd.f32 1.0, %v755_v22  ;;  %v598_v27 = vmul.f32 %v588_v20, %v518_v0  ;;  %606 = vst.msk [vmem:[%s930_s11 + $0x8] sm:$0xff] %vm394_vm4, %v596_v21 }
 0x163   : > { %v759_v3 = vpop.eup %758  ;;  %v591_v29 = vadd.f32 1.0, %v757_v1  ;;  %v599_v30 = vmul.f32 %v589_v24, %v519_v23  ;;  %607 = vst.msk [vmem:[%s930_s11 + $0x10] sm:$0xff] %vm394_vm4, %v597_v25 }
 0x164   : > { %v761_v4 = vpop.eup %760  ;;  %v592_v32 = vadd.f32 1.0, %v759_v3  ;;  %v600_v5 = vmul.f32 %v590_v26, %v520_v2  ;;  %608 = vst.msk [vmem:[%s930_s11 + $0x18] sm:$0xff] %vm394_vm4, %v598_v27 }
 0x165   : > { %v763_v33 = vpop.eup %762  ;;  %v593_v8 = vadd.f32 1.0, %v761_v4  ;;  %v601_v35 = vmul.f32 %v591_v29, %v521_v28  ;;  %609 = vst.msk [vmem:[%s930_s11 + $0x20] sm:$0xff] %vm394_vm4, %v599_v30 }
 0x166   : > { %v594_v37 = vadd.f32 1.0, %v763_v33  ;;  %v602_v38 = vmul.f32 %v592_v32, %v522_v31  ;;  %610 = vst.msk [vmem:[%s930_s11 + $0x28] sm:$0xff] %vm394_vm4, %v600_v5 }
 0x167   : > { %v603_v9 = vmul.f32 %v593_v8, %v523_v34  ;;  %611 = vst.msk [vmem:[%s930_s11 + $0x30] sm:$0xff] %vm394_vm4, %v601_v35 }
 0x168   : > { %v604_v39 = vmul.f32 %v594_v37, %v524_v36  ;;  %612 = vst.msk [vmem:[%s930_s11 + $0x38] sm:$0xff] %vm394_vm4, %v602_v38 }
 0x169   : > { %613 = vst.msk [vmem:[%s930_s11 + $0x40] sm:$0xff] %vm394_vm4, %v603_v9 }
 0x16a   : > { %614 = vst.msk [vmem:[%s930_s11 + $0x48] sm:$0x7f] %vm412_vm5, %v604_v39 }
 0x16b PF: > { %s15_s18 = sadd.s32 1, %s770_s18  }
 0x16c   : > { %p12_p4 = scmp.ge.s32.totalorder %s15_s18, 4  }
 0x16e   :  { %14 = sbr.rel (!%p12_p4) target bundleno = 1 (0x1), region = 70 }

</bundles_post_ra>
